<compile_context>
chip_gen: v5e
topology: v5e:2x2
jax: 0.10.0
libtpu: 0.0.40
codegen_flags: <defaults>
</compile_context>

<pallas_src>
import functools
import math

import jax
import jax.numpy as jnp
from jax import lax
from jax.experimental import pallas as pl
from jax.experimental.pallas import tpu as pltpu


def _horizontal_attention_kernel(x_ref, wqkv_ref, bqkv_ref, o_ref, acc_ref, *,
                                 inv_h):
    """One grid step.

    x_ref    : (b_tile, C, h_tile, W)  current H-chunk of the input tile
    wqkv_ref : (3O, C)                 fused Q/K/V weights
    bqkv_ref : (3O, 1)                 fused Q/K/V bias (broadcast over W)
    o_ref    : (b_tile, O, W)          output tile (resident across the H axis)
    acc_ref  : (b_tile, C, W) f32      running sum over H (scratch)
    """
    j = pl.program_id(1)
    n_h = pl.num_programs(1)
    b_tile = x_ref.shape[0]
    out_c = wqkv_ref.shape[0] // 3
    scale = 1.0 / math.sqrt(out_c)

    # ---- strip pooling: streamed partial sum over this H chunk -------------
    @pl.when(j == 0)
    def _():
        acc_ref[...] = jnp.zeros_like(acc_ref)

    # Single vectorized reduction over the whole batch tile (H is the sublane
    # axis of the block, W stays on lanes).
    acc_ref[...] += jnp.sum(x_ref[...].astype(jnp.float32), axis=2)

    # ---- attention on the pooled strip (finalize on the last H chunk) ------
    @pl.when(j == n_h - 1)
    def _():
        w = wqkv_ref[...].astype(jnp.float32)        # (3O, C)
        bias = bqkv_ref[...].astype(jnp.float32)     # (3O, 1)
        s_all = acc_ref[...] * inv_h                 # (b_tile, C, W) = mean over H

        # Static unroll over the batch tile (wrapper caps b_tile at 8).
        for i in range(b_tile):
            s = s_all[i]                             # (C, W), W on lanes

            # Fused Q/K/V projection: one MXU matmul instead of three tiny
            # ones; bias is (3O, 1), broadcast over W.
            proj = lax.dot_general(
                w, s, (((1,), (0,)), ((), ())),
                preferred_element_type=jnp.float32) + bias
            qT = proj[:out_c]                        # (O, W)
            kT = proj[out_c:2 * out_c]               # (O, W)
            vT = proj[2 * out_c:]                    # (O, W)

            # logits = (Q K^T) / sqrt(O).  Only transpose in the kernel: the
            # tiny (O, W) -> (W, O) flip of Q.  K and V stay in (O, W) layout
            # and the MXU contracts them directly.
            q = qT.T * scale                         # (W, O)
            logits = lax.dot_general(
                q, kT, (((1,), (0,)), ((), ())),
                preferred_element_type=jnp.float32)  # (W, W)

            # Row softmax.  Denominator reciprocal runs on the EUP
            # (approx=True, otherwise-idle slot); two Newton steps on the VPU
            # restore full f32 accuracy.
            m = jnp.max(logits, axis=-1, keepdims=True)
            e = jnp.exp(logits - m)
            denom = jnp.sum(e, axis=-1, keepdims=True)
            r = pl.reciprocal(denom, approx=True)
            r = r * (2.0 - denom * r)
            r = r * (2.0 - denom * r)
            attn = e * r                             # (W, W)

            # out^T computed directly: (O, W_k) x (W_q, W_k) contracted over
            # W_k -> (O, W_q).  Lands in the module's (O, W) output layout, so
            # no final transpose before the store.
            outT = lax.dot_general(
                vT, attn, (((1,), (1,)), ((), ())),
                preferred_element_type=jnp.float32)
            o_ref[i] = outT.astype(o_ref.dtype)


def _pick_tiles(B, C, H, W, O, *, unroll_cap=8,
                vmem_budget_bytes=24 * 1024 * 1024):
    """Choose (b_tile, h_tile).

    h_tile: full H when the per-batch block fits a conservative VMEM budget
    (safe for v7x's 64 MiB/TC as well as v5e/v6e); otherwise the largest
    multiple-of-8 divisor of H that fits (the streamed H reduction then keeps
    VMEM bounded for arbitrarily large C*H*W).

    b_tile: largest divisor of B that (a) keeps the double-buffered blocks +
    scratch inside the budget, (b) stays under the static unroll cap, and
    (c) leaves >= 2 grid steps on the parallel axis so both v7x TensorCores
    get work.
    """
    def per_b(h_tile):
        return 4 * (2 * C * h_tile * W          # x block (double-buffered)
                    + 2 * O * W                 # out block (double-buffered)
                    + C * W                     # acc scratch
                    + C * W + 3 * O * W + 2 * W * W)  # in-kernel values

    h_tile = H
    if per_b(H) > vmem_budget_bytes and H > 8:
        cands = [d for d in range(8, H, 8)
                 if H % d == 0 and per_b(d) <= vmem_budget_bytes]
        if cands:
            h_tile = max(cands)
        elif H % 8 == 0:
            h_tile = 8

    cap = max(1, min(unroll_cap, vmem_budget_bytes // max(1, per_b(h_tile))))
    if B >= 2:
        cap = min(cap, max(1, B // 2))
    b_tile = 1
    for d in range(1, min(cap, B) + 1):
        if B % d == 0:
            b_tile = d
    return b_tile, h_tile


def horizontal_attention(x, wq, bq, wk, bk, wv, bv, *, b_tile=None,
                         h_tile=None, expand_h=True):
    """x: (B, C, H, W) float32.  Weights in PyTorch nn.Linear layout:
    w*: (out_channels, C), b*: (out_channels,).
    Returns (B, out_channels, H, W) if expand_h else (B, out_channels, 1, W)."""
    B, C, H, W = x.shape
    O = wq.shape[0]

    # Fuse the three projections into one weight/bias -> one MXU matmul.
    wqkv = jnp.concatenate([wq, wk, wv], axis=0)              # (3O, C)
    bqkv = jnp.concatenate([bq, bk, bv], axis=0)[:, None]     # (3O, 1)

    auto_b, auto_h = _pick_tiles(B, C, H, W, O)
    if b_tile is None:
        b_tile = auto_b
    if h_tile is None:
        h_tile = auto_h
    assert B % b_tile == 0, "b_tile must divide the batch size"
    assert H % h_tile == 0, "h_tile must divide H"
    grid = (B // b_tile, H // h_tile)

    kernel = functools.partial(_horizontal_attention_kernel, inv_h=1.0 / H)

    strip_out = pl.pallas_call(
        kernel,
        out_shape=jax.ShapeDtypeStruct((B, O, W), x.dtype),
        grid=grid,
        in_specs=[
            pl.BlockSpec((b_tile, C, h_tile, W), lambda i, j: (i, 0, j, 0)),  # x
            pl.BlockSpec((3 * O, C), lambda i, j: (0, 0)),                    # wqkv
            pl.BlockSpec((3 * O, 1), lambda i, j: (0, 0)),                    # bqkv
        ],
        out_specs=pl.BlockSpec((b_tile, O, W), lambda i, j: (i, 0, 0)),
        scratch_shapes=[pltpu.VMEM((b_tile, C, W), jnp.float32)],
        compiler_params=pltpu.CompilerParams(
            dimension_semantics=("parallel", "arbitrary"),
            vmem_limit_bytes=48 * 1024 * 1024,
        ),
    )(x, wqkv, bqkv)

    strip_out = strip_out[:, :, None, :]                      # (B, O, 1, W)
    if expand_h:
        # torch `.expand((-1, -1, H, -1))`: pure broadcast over H (zero-copy
        # view in PyTorch).  Prefer expand_h=False in real pipelines so the
        # H-times-larger tensor is never materialized in HBM.
        return jnp.broadcast_to(strip_out, (B, O, H, W))
    return strip_out


def _reference(x, wq, bq, wk, bk, wv, bv):
    """Pure-JAX reference mirroring the PyTorch forward (weights (O, C))."""
    B, C, H, W = x.shape
    O = wq.shape[0]
    strip = jnp.mean(x, axis=2)                       # (B, C, W)
    s = jnp.transpose(strip, (0, 2, 1))               # (B, W, C)
    Q = s @ wq.T + bq
    K = s @ wk.T + bk
    V = s @ wv.T + bv
    qk = jnp.einsum('bwo,bvo->bwv', Q, K) / math.sqrt(O)
    qk = jax.nn.softmax(qk, axis=-1)
    qkv = jnp.einsum('bwv,bvo->bwo', qk, V)           # (B, W, O)
    qkv = jnp.transpose(qkv, (0, 2, 1))[:, :, None, :]
    return jnp.broadcast_to(qkv, (B, O, H, W))


if __name__ == "__main__":
    B, C, H, W = 2, 4, 16, 16
    out_channels = 8

    key = jax.random.PRNGKey(0)
    kx, kq, kbq, kk, kbk, kv, kbv = jax.random.split(key, 7)

    x = jax.random.normal(kx, (B, C, H, W), dtype=jnp.float32)

    # nn.Linear(channels, out_channels) parameters in PyTorch layout (out, in).
    bound = 1.0 / math.sqrt(C)
    wq = jax.random.uniform(kq, (out_channels, C), jnp.float32, -bound, bound)
    bq = jax.random.uniform(kbq, (out_channels,), jnp.float32, -bound, bound)
    wk = jax.random.uniform(kk, (out_channels, C), jnp.float32, -bound, bound)
    bk = jax.random.uniform(kbk, (out_channels,), jnp.float32, -bound, bound)
    wv = jax.random.uniform(kv, (out_channels, C), jnp.float32, -bound, bound)
    bv = jax.random.uniform(kbv, (out_channels,), jnp.float32, -bound, bound)

    out = horizontal_attention(x, wq, bq, wk, bk, wv, bv)
    out = jax.block_until_ready(out)

    ref = jax.block_until_ready(_reference(x, wq, bq, wk, bk, wv, bv))
    assert out.shape == (B, out_channels, H, W)
    assert jnp.allclose(out, ref, atol=1e-5, rtol=1e-5), "mismatch vs reference"

    print("KERNEL_OK")
</pallas_src>

<mosaic_0001>
module attributes {stable_mosaic.version = 11 : i64} {
  func.func @_horizontal_attention_kernel(%arg0: i32, %arg1: i32, %arg2: memref<1x4x16x16xf32, #tpu.memory_space<vmem>>, %arg3: memref<24x4xf32, #tpu.memory_space<vmem>>, %arg4: memref<24x1xf32, #tpu.memory_space<vmem>>, %arg5: memref<1x8x16xf32, #tpu.memory_space<vmem>>, %arg6: memref<1x4x16xf32, #tpu.memory_space<vmem>>) attributes {dimension_semantics = [#tpu.dimension_semantics<parallel>, #tpu.dimension_semantics<arbitrary>], iteration_bounds = array<i64: 2, 1>, scalar_prefetch = 0 : i64, scratch_operands = 1 : i64, tpu.core_type = #tpu.core_type<tc>, window_params = [{transform_indices = @transform_0, window_bounds = array<i64: 1, 4, 16, 16>}, {pipeline_mode = #tpu.pipeline_mode<synchronous>, transform_indices = @transform_1, window_bounds = array<i64: 24, 4>}, {pipeline_mode = #tpu.pipeline_mode<synchronous>, transform_indices = @transform_2, window_bounds = array<i64: 24, 1>}, {transform_indices = @transform_3, window_bounds = array<i64: 1, 8, 16>}]} {
    %c0_i32 = arith.constant 0 : i32
    %0 = arith.cmpi eq, %arg1, %c0_i32 : i32
    %1 = arith.extui %0 : i1 to i32
    %c0_i32_0 = arith.constant 0 : i32
    %2 = arith.cmpi ne, %1, %c0_i32_0 : i32
    scf.if %2 {
      %cst_12 = arith.constant 0.000000e+00 : f32
      %11 = vector.broadcast %cst_12 : f32 to vector<1x4x16xf32>
      %c0_13 = arith.constant 0 : index
      %c0_14 = arith.constant 0 : index
      %c0_15 = arith.constant 0 : index
      %12 = vector.load %arg6[%c0_13, %c0_14, %c0_15] : memref<1x4x16xf32, #tpu.memory_space<vmem>>, vector<1x4x16xf32>
      tpu.vector_store %arg6[%c0_13, %c0_14, %c0_15], %11 {strides = array<i32>} : memref<1x4x16xf32, #tpu.memory_space<vmem>>, vector<1x4x16xf32>,
    } else {
    }
    %c0 = arith.constant 0 : index
    %c0_1 = arith.constant 0 : index
    %c0_2 = arith.constant 0 : index
    %3 = vector.load %arg6[%c0, %c0_1, %c0_2] : memref<1x4x16xf32, #tpu.memory_space<vmem>>, vector<1x4x16xf32>
    %c0_3 = arith.constant 0 : index
    %c0_4 = arith.constant 0 : index
    %c0_5 = arith.constant 0 : index
    %c0_6 = arith.constant 0 : index
    %4 = vector.load %arg2[%c0_3, %c0_4, %c0_5, %c0_6] : memref<1x4x16x16xf32, #tpu.memory_space<vmem>>, vector<1x4x16x16xf32>
    %cst = arith.constant dense<0.000000e+00> : vector<1x4x16xf32>
    %5 = vector.multi_reduction <add>, %4, %cst [2] : vector<1x4x16x16xf32> to vector<1x4x16xf32>
    %6 = arith.addf %3, %5 : vector<1x4x16xf32>
    %c0_7 = arith.constant 0 : index
    %c0_8 = arith.constant 0 : index
    %c0_9 = arith.constant 0 : index
    %7 = vector.load %arg6[%c0_7, %c0_8, %c0_9] : memref<1x4x16xf32, #tpu.memory_space<vmem>>, vector<1x4x16xf32>
    tpu.vector_store %arg6[%c0_7, %c0_8, %c0_9], %6 {strides = array<i32>} : memref<1x4x16xf32, #tpu.memory_space<vmem>>, vector<1x4x16xf32>,
    %c0_i32_10 = arith.constant 0 : i32
    %8 = arith.cmpi eq, %arg1, %c0_i32_10 : i32
    %9 = arith.extui %8 : i1 to i32
    %c0_i32_11 = arith.constant 0 : i32
    %10 = arith.cmpi ne, %9, %c0_i32_11 : i32
    scf.if %10 {
      %c0_12 = arith.constant 0 : index
      %c0_13 = arith.constant 0 : index
      %11 = vector.load %arg3[%c0_12, %c0_13] : memref<24x4xf32, #tpu.memory_space<vmem>>, vector<24x4xf32>
      %c0_14 = arith.constant 0 : index
      %c0_15 = arith.constant 0 : index
      %12 = vector.load %arg4[%c0_14, %c0_15] : memref<24x1xf32, #tpu.memory_space<vmem>>, vector<24x1xf32>
      %c0_16 = arith.constant 0 : index
      %c0_17 = arith.constant 0 : index
      %c0_18 = arith.constant 0 : index
      %13 = vector.load %arg6[%c0_16, %c0_17, %c0_18] : memref<1x4x16xf32, #tpu.memory_space<vmem>>, vector<1x4x16xf32>
      %cst_19 = arith.constant 6.250000e-02 : f32
      %14 = vector.broadcast %cst_19 : f32 to vector<1x4x16xf32>
      %15 = arith.mulf %13, %14 : vector<1x4x16xf32>
      %16 = vector.shape_cast %15 : vector<1x4x16xf32> to vector<4x16xf32>
      %cst_20 = arith.constant dense<0.000000e+00> : vector<24x16xf32>
      %17 = tpu.matmul %11, %16, %cst_20 {dimension_numbers = #tpu.dot_dimension_numbers<[1], [0], [0], [1], [0, 0, 1, 1], [], []>} : vector<24x4xf32>, vector<4x16xf32>, vector<24x16xf32> -> vector<24x16xf32>
      %18 = vector.broadcast %12 : vector<24x1xf32> to vector<24x16xf32>
      %19 = arith.addf %17, %18 : vector<24x16xf32>
      %20 = vector.extract_strided_slice %19 {offsets = [0, 0], sizes = [8, 16], strides = [1, 1]} : vector<24x16xf32> to vector<8x16xf32>
      %21 = vector.extract_strided_slice %19 {offsets = [8, 0], sizes = [8, 16], strides = [1, 1]} : vector<24x16xf32> to vector<8x16xf32>
      %22 = vector.extract_strided_slice %19 {offsets = [16, 0], sizes = [8, 16], strides = [1, 1]} : vector<24x16xf32> to vector<8x16xf32>
      %23 = tpu.transpose %20, [1, 0] : vector<8x16xf32> -> vector<16x8xf32>
      %cst_21 = arith.constant 0.353553385 : f32
      %24 = vector.broadcast %cst_21 : f32 to vector<16x8xf32>
      %25 = arith.mulf %23, %24 : vector<16x8xf32>
      %cst_22 = arith.constant dense<0.000000e+00> : vector<16x16xf32>
      %26 = tpu.matmul %25, %21, %cst_22 {dimension_numbers = #tpu.dot_dimension_numbers<[1], [0], [0], [1], [0, 0, 1, 1], [], []>} : vector<16x8xf32>, vector<8x16xf32>, vector<16x16xf32> -> vector<16x16xf32>
      %cst_23 = arith.constant dense<0xFF800000> : vector<16xf32>
      %27 = vector.multi_reduction <maximumf>, %26, %cst_23 [1] : vector<16x16xf32> to vector<16xf32>
      %28 = vector.shape_cast %27 : vector<16xf32> to vector<16x1xf32>
      %29 = vector.broadcast %28 : vector<16x1xf32> to vector<16x16xf32>
      %30 = arith.subf %26, %29 : vector<16x16xf32>
      %31 = math.exp %30 : vector<16x16xf32>
      %cst_24 = arith.constant dense<0.000000e+00> : vector<16xf32>
      %32 = vector.multi_reduction <add>, %31, %cst_24 [1] : vector<16x16xf32> to vector<16xf32>
      %33 = vector.shape_cast %32 : vector<16xf32> to vector<16x1xf32>
      %34 = tpu.reciprocal %33 {approx = true} : vector<16x1xf32> -> vector<16x1xf32>
      %35 = arith.mulf %33, %34 : vector<16x1xf32>
      %cst_25 = arith.constant 2.000000e+00 : f32
      %36 = vector.broadcast %cst_25 : f32 to vector<16x1xf32>
      %37 = arith.subf %36, %35 : vector<16x1xf32>
      %38 = arith.mulf %34, %37 : vector<16x1xf32>
      %39 = arith.mulf %33, %38 : vector<16x1xf32>
      %cst_26 = arith.constant 2.000000e+00 : f32
      %40 = vector.broadcast %cst_26 : f32 to vector<16x1xf32>
      %41 = arith.subf %40, %39 : vector<16x1xf32>
      %42 = arith.mulf %38, %41 : vector<16x1xf32>
      %43 = vector.broadcast %42 : vector<16x1xf32> to vector<16x16xf32>
      %44 = arith.mulf %31, %43 : vector<16x16xf32>
      %cst_27 = arith.constant dense<0.000000e+00> : vector<8x16xf32>
      %45 = tpu.matmul %22, %44, %cst_27 {dimension_numbers = #tpu.dot_dimension_numbers<[1], [1], [0], [0], [0, 0, 1, 0], [], []>} : vector<8x16xf32>, vector<16x16xf32>, vector<8x16xf32> -> vector<8x16xf32>
      %c0_28 = arith.constant 0 : index
      %c0_29 = arith.constant 0 : index
      %c0_30 = arith.constant 0 : index
      %46 = vector.load %arg5[%c0_28, %c0_29, %c0_30] : memref<1x8x16xf32, #tpu.memory_space<vmem>>, vector<1x8x16xf32>
      %47 = vector.shape_cast %46 : vector<1x8x16xf32> to vector<8x16xf32>
      %48 = vector.shape_cast %45 : vector<8x16xf32> to vector<1x8x16xf32>
      tpu.vector_store %arg5[%c0_28, %c0_29, %c0_30], %48 {strides = array<i32>} : memref<1x8x16xf32, #tpu.memory_space<vmem>>, vector<1x8x16xf32>,
    } else {
    }
    return
  }
  func.func @transform_0(%arg0: i32, %arg1: i32) -> (i32, i32, i32, i32) {
    %c0_i32 = arith.constant 0 : i32
    %c0_i32_0 = arith.constant 0 : i32
    %c0_i32_1 = arith.constant 0 : i32
    return %arg0, %c0_i32, %arg1, %c0_i32_0 : i32, i32, i32, i32
  }
  func.func @transform_1(%arg0: i32, %arg1: i32) -> (i32, i32) {
    %c0_i32 = arith.constant 0 : i32
    %c0_i32_0 = arith.constant 0 : i32
    %c0_i32_1 = arith.constant 0 : i32
    return %c0_i32, %c0_i32_0 : i32, i32
  }
  func.func @transform_2(%arg0: i32, %arg1: i32) -> (i32, i32) {
    %c0_i32 = arith.constant 0 : i32
    %c0_i32_0 = arith.constant 0 : i32
    %c0_i32_1 = arith.constant 0 : i32
    return %c0_i32, %c0_i32_0 : i32, i32
  }
  func.func @transform_3(%arg0: i32, %arg1: i32) -> (i32, i32, i32) {
    %c0_i32 = arith.constant 0 : i32
    %c0_i32_0 = arith.constant 0 : i32
    %c0_i32_1 = arith.constant 0 : i32
    return %arg0, %c0_i32, %c0_i32_0 : i32, i32, i32
  }
}

</mosaic_0001>

<bundles_post_ra>
// kernel: tpu_custom_call.1
= control target key start
LH: loop header
LB: loop body
LE: loop exit
PB: predicated region body
PF: predicated region fallthrough
CT: control target
= control target key end

     0   :  { %8 = vsyncpa [#allocation4], 0  ;;  %s964_s0 = inlined_call_operand.hbm [shape: f32[2,4,16,16], index: 0, kind: input, shape index: {}]   ;;  %s965_s1 = inlined_call_operand.vmem [shape: f32[24,4], index: 1, kind: input, shape index: {}]   ;;  %s966_s2 = inlined_call_operand.vmem [shape: f32[24,1], index: 2, kind: input, shape index: {}]   ;;  %s967_s3 = inlined_call_operand.hbm [shape: f32[2,8,16], index: 3, kind: output, shape index: {}]  }
   0x1   :  { %10 = vsyncpa [#allocation4 + $0x1], 0 }
   0x2   :  { %11 = vsyncpa [#allocation5], 0 }
   0x3   :  { %13 = vsyncpa [#allocation5 + $0x1], 0  ;;  %s804_s12 = smov 0   ;;  %s806_s13 = smov 0  }
   0x4   :  { %s808_s14 = smov 0   ;;  %s810_s15 = smov 0  }
   0x5   :  { %s812_s16 = smov 0   ;;  %s814_s17 = smov 0  }
   0x6 LB: > { %s565_s18 = sadd.s32 4294967295, %s778_s17   ;;  %s566_s19 = sadd.s32 4294967294, %s778_s17   ;;  %s778_s17 = sphi %s814_s17, %s19_s17   ;;  %s774_s16 = sphi %s812_s16, %s976_s16   ;;  %s770_s15 = sphi %s810_s15, %s975_s15   ;;  %s766_s14 = sphi %s808_s14, %s974_s14   ;;  %s762_s13 = sphi %s806_s13, %s973_s13   ;;  %s758_s12 = sphi %s804_s12, %s972_s12  }
   0x7   : > { %s31_s20 = sadd.s32 1, %s774_s16  ;;  %s40_s21 = sadd.s32 1, %s766_s14 }
   0x8   : > { %p33_p0 = scmp.ge.s32.totalorder %s31_s20, 2  ;;  %p47_p1 = scmp.ne.s32.totalorder %s766_s14, %s762_s13 }
   0x9   : > { %p48_p2 = scmp.eq.s32.totalorder %s778_s17, 0  ;;  %p53_p3 = scmp.ne.s32.totalorder %s762_s13, %s758_s12 }
   0xa   : > { %s978_s20 = smov (%p33_p0, %s31_s20), 0  ;;  %p54_p5 = scmp.eq.s32.totalorder %s565_s18, 0 }
   0xb   : > { %p845_p4 = por %p48_p2, %p47_p1  ;;  %s35_s23 = ssub.s32 %s774_s16, %s978_s20 }
   0xc   : > { %p119_p6 = scmp.eq.s32.totalorder %s565_s18, 1  ;;  %p38_p7 = scmp.eq.s32.totalorder %s35_s23, 0 }
   0xd   : > { %p851_p8 = por %p54_p5, %p53_p3  ;;  %p125_p10 = scmp.eq.s32.totalorder %s566_s19, 1 }
   0xe   : > { %p855_p9 = por %p119_p6, %p47_p1  ;;  %p568_p12 = scmp.ge.s32.totalorder %s778_s17, 2 }
   0xf   : > { %s860_s26 = scalar_select %p38_p7, %s766_s14, %s40_s21  }
  0x10   : > { %p862_p11 = por %p125_p10, %p53_p3  ;;  %p602_p13 = scmp.lt.s32.totalorder %s778_s17, 2 }
  0x11   : > { %s151_s28 = sand.u32 1, %s766_s14   ;;  %s588_s30 = sshll.u32 %s774_s16, 6 }
  0x12   : > { %s569_s29 = sshll.u32 %s151_s28, 6  ;;  %s162_s6 = scalar_lea.hbm %s964_s0, %s588_s30 }
  0x13   : > { %s155_s7 = scalar_lea.vmem [#allocation3], %s569_s29  ;;  %s163_s9 = sshll.u32 %s162_s6, 4  ;;  %s164_s9 = int_to_ptr.hbm [resolvable:$true] %s163_s9 }
  0x14   : > { %s165_s8 = sshll.u32 %s155_s7, 4  ;;  %p595_p0 = pnand %p602_p13, %p845_p4  ;;  %s166_s8 = int_to_ptr.vmem [resolvable:$true] %s165_s8 }
  0x15   : > { %p572_p1 = scmp.ge.s32.totalorder %s778_s17, 1  ;;  %s152_s10 = scalar_lea.sflag [#allocation4], %s151_s28 }
  0x16   : > { %s780_s11 = smov 128   ;;  %s781_s18 = smov 8  }
  0x17   : > { %597 = dma.hbm_to_vmem [thread:$0]  (!%p595_p0), %s164_s9, 1024, %s166_s8, %s152_s10, %s780_s11, %s780_s11, %s781_s18  }
  0x18   : > { %p173_p2 = scmp.lt.s32.totalorder %s778_s17, 3 }
  0x1a   : > { %p174_p3 = pnand %p572_p1, %p173_p2 }
  0x1b   : > { %s878_s19 = sand.u32 (!%p174_p3), 1, %s762_s13  }
  0x1c   : > { %177 = sbr.rel (%p174_p3) target bundleno = 904 (0x388), region = 32  ;;  %s573_s21 = sshll.u32 (!%p174_p3), %s878_s19, 6 }
  0x1d   : > { %s180_s23 = scalar_lea.sflag (!%p174_p3), [#allocation4], %s878_s19  ;;  %s183_s29 = scalar_lea.vmem (!%p174_p3), [#allocation3], %s573_s21 }
  0x21   : > { %749 = dma.done.wait (%p851_p8), %s180_s23, 1024  }
  0x22   : > { %751 = vsyncadd (%p851_p8), %s180_s23, 4294966272  ;;  %vm212_vm0 = vcmask 125952   ;;  %v782_v0 = vmov 0.0   ;;  %vm223_vm1 = vcmask 130048   ;;  %v215_v1 = vld [vmem:[%s183_s29] sm:$0xff]  ;;  %v216_v2 = vld [vmem:[%s183_s29 + $0x8] sm:$0xff] }
  0x23   : > { %213 = vst.msk [vmem:[#allocation2] sm:$0xf] %vm212_vm0, %v782_v0  ;;  %v217_v3 = vld [vmem:[%s183_s29 + $0x10] sm:$0xff]  ;;  %v218_v4 = vld [vmem:[%s183_s29 + $0x18] sm:$0xff]  ;;  %v219_v5 = vld [vmem:[%s183_s29 + $0x20] sm:$0xff]  ;;  %v224_v6 = vsel %vm223_vm1, %v215_v1, 0.0 }
  0x24   : > { %v225_v7 = vsel %vm223_vm1, %v216_v2, 0.0  ;;  %v220_v8 = vld [vmem:[%s183_s29 + $0x28] sm:$0xff]  ;;  %v221_v9 = vld [vmem:[%s183_s29 + $0x30] sm:$0xff]  ;;  %v222_v10 = vld [vmem:[%s183_s29 + $0x38] sm:$0xff]  ;;  %v233_v12 = vsel %vm223_vm1, %v217_v3, 0.0  ;;  %v234_v13 = vsel %vm223_vm1, %v218_v4, 0.0 }
  0x25   : > { %v226_v11 = vadd.f32 %v225_v7, %v224_v6  ;;  %v242_v14 = vsel %vm223_vm1, %v219_v5, 0.0  ;;  %v235_v15 = vadd.f32 %v234_v13, %v233_v12  ;;  %v243_v16 = vsel %vm223_vm1, %v220_v8, 0.0  ;;  %v280_v19 = vld [vmem:[%s966_s2] sm:$0xff]  ;;  %v281_v37 = vld [vmem:[%s966_s2 + $0x8] sm:$0xff]  ;;  %v279_v7 = vld [vmem:[%s965_s1 + $0x10] sm:$0xff]  ;;  %s574_s18 = sshll.u32 %s878_s19, 3 }
  0x26   : > { %v251_v17 = vsel %vm223_vm1, %v221_v9, 0.0  ;;  %v252_v18 = vsel %vm223_vm1, %v222_v10, 0.0  ;;  %v244_v21 = vadd.f32 %v243_v16, %v242_v14  ;;  %v783_v24 = vmov 0   ;;  %v277_v55 = vld [vmem:[%s965_s1] sm:$0xff]  ;;  %v278_v56 = vld [vmem:[%s965_s1 + $0x8] sm:$0xff]  ;;  %s585_s21 = sshll.u32 %s770_s15, 3 }
  0x27   : > { %v227_v20 = vrot.slane %v226_v11, 4  ;;  %v253_v22 = vadd.f32 %v252_v18, %v251_v17  ;;  %v236_v23 = vrot.slane %v235_v15, 4  ;;  %656 = vset.pattern.permute.xlu0 %v783_v24  ;;  %657 = vset.pattern.permute.xlu2 %v783_v24  ;;  %vm264_vm2 = vcmask 1041409   ;;  %v282_v18 = vld [vmem:[%s966_s2 + $0x10] sm:$0xff]  ;;  %s479_s22 = scalar_lea.hbm %s967_s3, %s585_s21  ;;  %s206_s24 = scalar_lea.vmem [#allocation6], %s574_s18 }
  0x28   : > { %v245_v26 = vrot.slane %v244_v21, 4  ;;  %287 = vperm.xlu0 %656, %v280_v19   ;;  %vm266_vm3 = vcmask 1042434   ;;  %vm268_vm4 = vcmask 1043459   ;;  %vm310_vm5 = vcmask 1043456   ;;  %s481_s28 = sshll.u32 %s206_s24, 4  ;;  %s483_s30 = sshll.u32 %s479_s22, 4  ;;  %s482_s28 = int_to_ptr.vmem [resolvable:$true] %s481_s28  ;;  %s484_s30 = int_to_ptr.hbm [resolvable:$true] %s483_s30 }
  0x29   : > { %v228_v25 = vadd.f32 %v227_v20, %v226_v11  ;;  %v254_v27 = vrot.slane %v253_v22, 4  ;;  %v237_v28 = vadd.f32 %v236_v23, %v235_v15  ;;  %vm300_vm6 = vcmask 31744   ;;  %s469_s4 = scalar_lea.sflag [#allocation5], %s878_s19  ;;  %s710_s5 = sshra.s32 %s484_s30, 4  ;;  %s711_s5 = int_to_ptr.hbm [resolvable:$true] %s710_s5 }
  0x2a   : > { %v246_v30 = vadd.f32 %v245_v26, %v244_v21  ;;  %v214_v48 = vld [vmem:[#allocation2] sm:$0xf]  ;;  %vm374_vm7 = vcmask 64512   ;;  %s712_s6 = scalar_lea.hbm %s711_s5, 8  ;;  %s716_s8 = scalar_lea.hbm %s967_s3, 16 }
  0x2b   : > { %v229_v29 = vrot.slane %v228_v25, 2  ;;  %v255_v31 = vadd.f32 %v254_v27, %v253_v22  ;;  %v238_v32 = vrot.slane %v237_v28, 2  ;;  %p713_p4 = scmp.ne.s32.totalorder %s711_s5, %s712_s6  ;;  %p717_p7 = scmp.lt.s32.totalorder %s711_s5, %s967_s3 }
  0x2c   : > { %v247_v34 = vrot.slane %v246_v30, 2  ;;  %p718_p8 = scmp.lt.s32.totalorder %s716_s8, %s712_s6 }
  0x2d   : > { %v230_v33 = vadd.f32 %v229_v29, %v228_v25  ;;  %v256_v35 = vrot.slane %v255_v31, 2  ;;  %v239_v36 = vadd.f32 %v238_v32, %v237_v28  ;;  %p714_p5 = pnand %p713_p4, %p855_p9 }
  0x2e   : > { %v248_v39 = vadd.f32 %v247_v34, %v246_v30  ;;  %p719_p10 = por %p718_p8, %p717_p7 }
  0x2f   : > { %v231_v38 = vrot.slane %v230_v33, 1  ;;  %v257_v40 = vadd.f32 %v256_v35, %v255_v31  ;;  %v240_v41 = vrot.slane %v239_v36, 1  ;;  %p715_p6 = pneg %p714_p5 }
  0x30   : > { %v249_v43 = vrot.slane %v248_v39, 1  ;;  %292 = vperm.xlu0 %656, %v281_v37  }
  0x31   : > { %v232_v42 = vadd.f32 %v231_v38, %v230_v33  ;;  %v258_v44 = vrot.slane %v257_v40, 1  ;;  %v241_v45 = vadd.f32 %v240_v41, %v239_v36  ;;  %p720_p13 = pnand %p719_p10, %p715_p6 }
  0x32   : > { %v250_v46 = vadd.f32 %v249_v43, %v248_v39 }
  0x33   : > { %v259_v47 = vadd.f32 %v258_v44, %v257_v40  ;;  %v265_v49 = vsel %vm264_vm2, %v241_v45, %v232_v42 }
  0x34   : > { %v267_v50 = vsel %vm266_vm3, %v250_v46, %v265_v49 }
  0x35   : > { %v269_v51 = vsel %vm268_vm4, %v259_v47, %v267_v50 }
  0x36   : > { %v271_v52 = vadd.f32 %v269_v51, %v214_v48 }
  0x38   : > { %273 = vst.msk [vmem:[#allocation2] sm:$0xf] %vm212_vm0, %v271_v52 }
  0x3f   : > { %v283_v53 = vld [vmem:[#allocation2] sm:$0xf] }
  0x40   : > { %v284_v54 = vmul.f32 0.0625, %v283_v53 }
  0x42   : > { %575 = vmatpush.msk.msra.mxu0 %vm310_vm5, %v284_v54  ;;  %589 = vmatpush.msk.msra.mxu3 %vm310_vm5, %v284_v54 }
  0x43   : > { %576 = vmatmul.msk.f32.vlgmr.msra.gmra.mxu0 %vm300_vm6, %v277_v55  ;;  %577 = vmatmul.msk.f32.vlgmr.msra.gmra.mxu3 %vm300_vm6, %v278_v56 }
  0x4b   : > { %578 = vmatmul.msk.f32.gmra.mxu3 %vm300_vm6, %v279_v7 }
  0x9a   : > { %v288_v57 = vpop.permute.xlu0 %287 }
  0xa2   : > { %v293_v60 = vpop.permute.xlu0 %292 }
  0xc0   : > { %v331_v58 = vpop.f32.mrf.mxu0 }
  0xc1   : > { %v332_v59 = vadd.f32 %v331_v58, %v288_v57 }
  0xc3   : > { %340 = vxpose.xlu1.b32.start.end [1/1] (short) (narrow) %v332_v59, 16 }
  0xc6   : > { %v334_v61 = vpop.f32.mrf.mxu3 }
  0xc7   : > { %v335_v62 = vadd.f32 %v334_v61, %v293_v60 }
  0xc9   : > { %396 = vmatpush.msra.mxu1 %v335_v62 }
  0xce   : > { %v337_v36 = vpop.f32.mrf.mxu3 }
 0x167   : > { %v356_v63 = vpop.trf.xlu1 }
 0x168   : > { %v372_v0 = vmul.f32 0.35355338, %v356_v63 }
 0x16a   : > { %579 = vmatmul.msk.f32.vlgmr.msra.gmra.mxu1 %vm374_vm7, %v372_v0 }
 0x16f   : > { %v357_v1 = vpop.trf.xlu1 }
 0x170   : > { %v373_v2 = vmul.f32 0.35355338, %v357_v1 }
 0x172   : > { %580 = vmatmul.msk.f32.gmra.mxu1 %vm374_vm7, %v373_v2 }
 0x1e7   : > { %v398_v3 = vpop.f32.mrf.mxu1 }
 0x1e8   : > { %v404_v4 = vsel %vm223_vm1, %v398_v3, -inf }
 0x1e9   : > { %405 = vmax.xlane.f32.xlu2 %v404_v4 }
 0x1ef   : > { %v401_v5 = vpop.f32.mrf.mxu1 }
 0x1f0   : > { %v407_v6 = vsel %vm223_vm1, %v401_v5, -inf }
 0x1f1   : > { %408 = vmax.xlane.f32.xlu1 %v407_v6 }
 0x25c   : > { %v406_v8 = vpop.xlane.xlu2 %405 }
 0x25d   : > { %v410_v9 = vsub.f32 %v398_v3, %v406_v8 }
 0x25f   : > { %v412_v10 = vmul.f32 1.442695, %v410_v9 }
 0x261   : > { %658 = vpow2.f32 %v412_v10 }
 0x264   : > { %v409_v11 = vpop.xlane.xlu1 %408 }
 0x265   : > { %v411_v12 = vsub.f32 %v401_v5, %v409_v11 }
 0x267   : > { %v659_v13 = vpop.eup %658  ;;  %v414_v14 = vmul.f32 1.442695, %v411_v12 }
 0x268   : > { %v416_v15 = vsel %vm223_vm1, %v659_v13, 0.0 }
 0x269   : > { %660 = vpow2.f32 %v414_v14  ;;  %417 = vadd.xlane.f32.xlu0 %v416_v15 }
 0x26f   : > { %v661_v16 = vpop.eup %660 }
 0x270   : > { %v419_v17 = vsel %vm223_vm1, %v661_v16, 0.0 }
 0x271   : > { %420 = vadd.xlane.f32.xlu2 %v419_v17 }
 0x289   : > { %297 = vperm.xlu2 %657, %v282_v18  }
 0x2dc   : > { %v418_v19 = vpop.xlane.xlu0 %417 }
 0x2dd   : > { %662 = vrcp.f32 %v418_v19 }
 0x2e3   : > { %v663_v20 = vpop.eup %662 }
 0x2e4   : > { %v424_v21 = vmul.f32 %v663_v20, %v418_v19  ;;  %v421_v22 = vpop.xlane.xlu2 %420 }
 0x2e5   : > { %664 = vrcp.f32 %v421_v22 }
 0x2e6   : > { %v426_v23 = vsub.f32 2.0, %v424_v21 }
 0x2e8   : > { %v428_v25 = vmul.f32 %v663_v20, %v426_v23 }
 0x2ea   : > { %v430_v28 = vmul.f32 %v428_v25, %v418_v19 }
 0x2eb   : > { %v665_v24 = vpop.eup %664 }
 0x2ec   : > { %v425_v26 = vmul.f32 %v665_v24, %v421_v22  ;;  %v432_v31 = vsub.f32 2.0, %v430_v28  ;;  %v298_v37 = vpop.permute.xlu2 %297 }
 0x2ed   : > { %v338_v39 = vadd.f32 %v337_v36, %v298_v37 }
 0x2ee   : > { %v427_v27 = vsub.f32 2.0, %v425_v26  ;;  %v434_v34 = vmul.f32 %v432_v31, %v428_v25 }
 0x2f0   : > { %v429_v29 = vmul.f32 %v665_v24, %v427_v27  ;;  %v436_v38 = vmul.f32 %v659_v13, %v434_v34 }
 0x2f2   : > { %v431_v30 = vmul.f32 %v429_v29, %v421_v22 }
 0x2f4   : > { %v433_v32 = vsub.f32 2.0, %v431_v30 }
 0x2f6   : > { %v435_v33 = vmul.f32 %v433_v32, %v429_v29 }
 0x2f8   : > { %v437_v35 = vmul.f32 %v661_v16, %v435_v33 }
 0x2fa   : > { %581 = vmatpush.xpose.msk.msra.mxu2 %vm223_vm1, %v437_v35 }
 0x2fe   : > { %582 = vmatpush.xpose.msk.msra.mxu2 %vm223_vm1, %v436_v38 }
 0x301   : > { %583 = vmatmul.msk.f32.vlgmr.msra.gmra.mxu2 %vm223_vm1, %v338_v39 }
 0x384   : > { %v464_v40 = vpop.f32.mrf.mxu2 }
 0x385   : > { %467 = vst.msk [vmem:[%s206_s24] sm:$0xff] %vm223_vm1, %v464_v40 }
 0x386   : > { %723 = shalt.err (!%p720_p13)
}
 0x387   : > { %592 = dma.vmem_to_hbm [thread:$0]  (%p855_p9), %s482_s28, 128, %s484_s30, %s469_s4  }
 0x388 PF: > { %s495_s19 = sand.u32 1, %s758_s12   ;;  %p599_p0 = pnand %p568_p12, %p862_p11 }
 0x389   : > { %s496_s11 = scalar_lea.sflag [#allocation5], %s495_s19 }
 0x38a   : > { %p600_p1 = pneg %p599_p0 }
 0x38c   : > { %753 = dma.done.wait (%p600_p1), %s496_s11, 128  }
 0x38d   : > { %755 = vsyncadd (%p600_p1), %s496_s11, 4294967168  ;;  %s19_s17 = sadd.s32 1, %s778_s17   ;;  %s972_s12 = smov %s762_s13 }
 0x38e   : > { %p16_p2 = scmp.ge.s32.totalorder %s19_s17, 4   ;;  %s973_s13 = smov %s766_s14 }
 0x38f   : > { %s974_s14 = smov %s860_s26  ;;  %s975_s15 = smov %s774_s16 }
 0x390   : > { %s976_s16 = smov %s978_s20  ;;  %18 = sbr.rel (!%p16_p2) target bundleno = 6 (0x6), region = 85 }
 0x395   :  { %502 = vsyncpa [#allocation4], 1 }
 0x396   :  { %504 = vsyncpa [#allocation4 + $0x1], 1 }
 0x397   :  { %505 = vsyncpa [#allocation5], 1 }
 0x398   :  { %507 = vsyncpa [#allocation5 + $0x1], 1 }

</bundles_post_ra>
